<compile_context>
chip_gen: v5e
topology: v5e:2x2
jax: 0.10.0
libtpu: 0.0.40
codegen_flags: <defaults>
</compile_context>

<pallas_src>
import jax
import jax.numpy as jnp
from jax.experimental import pallas as pl
from jax.experimental.pallas import tpu as pltpu

OUT_DIM = 4   # real decoder output width
OUT_PAD = 8   # fc5 output columns padded 4 -> 8 (narrow f32 writeback slab)


def decoder_kernel(z_ref,
                   w1_ref, b1_ref,
                   w2_ref, b2_ref,
                   w3_ref, b3_ref,
                   w4_ref, b4_ref,
                   w5_ref, b5_ref,
                   out_ref):
    # bf16 operands into the MXU, f32 accumulation, f32 bias-add / ReLU on the VPU.
    x = z_ref[...]  # already bf16

    h = jnp.dot(x, w1_ref[...], preferred_element_type=jnp.float32) + b1_ref[...]
    h = jnp.maximum(h, 0.0)
    h = jnp.dot(h.astype(jnp.bfloat16), w2_ref[...],
                preferred_element_type=jnp.float32) + b2_ref[...]
    h = jnp.maximum(h, 0.0)
    h = jnp.dot(h.astype(jnp.bfloat16), w3_ref[...],
                preferred_element_type=jnp.float32) + b3_ref[...]
    h = jnp.maximum(h, 0.0)
    h = jnp.dot(h.astype(jnp.bfloat16), w4_ref[...],
                preferred_element_type=jnp.float32) + b4_ref[...]
    h = jnp.maximum(h, 0.0)
    y = jnp.dot(h.astype(jnp.bfloat16), w5_ref[...],
                preferred_element_type=jnp.float32) + b5_ref[...]

    out_ref[...] = y.astype(out_ref.dtype)


def _resident(arr):
    """Full-array block with a constant index_map: DMA'd once, stays VMEM-resident."""
    return pl.BlockSpec(arr.shape, lambda i: (0, 0))


def _round_up(x, m):
    return ((x + m - 1) // m) * m


def decoder_forward(z, params, *, block_m=1024):
    """z: (B, 256 + noise_dim), ideally bf16.  Returns (B, 4) float32."""
    B, K = z.shape

    # bf16 activations end-to-end; cast only if the caller passed wider dtype.
    if z.dtype != jnp.bfloat16:
        z = z.astype(jnp.bfloat16)

    # Batch tile: multiple of 16 (bf16 sublane packing), as large as block_m,
    # but capped so the grid has >= 2 steps when the batch allows it (v7x has
    # two TensorCores sharing the chip; a single tile would leave one idle).
    rounded_b = _round_up(B, 16)
    tm = min(block_m, rounded_b)
    if tm == rounded_b and rounded_b >= 32:
        tm = _round_up(pl.cdiv(rounded_b, 2), 16)
    padded_B = pl.cdiv(B, tm) * tm
    if padded_B != B:
        # Only a tile-remainder of rows; fuses with the bf16 cast above.  No copy
        # happens at all when the caller supplies bf16 z with B a tile multiple.
        z = jnp.pad(z, ((0, padded_B - B), (0, 0)))

    weights = (params["w1"], params["b1"],
               params["w2"], params["b2"],
               params["w3"], params["b3"],
               params["w4"], params["b4"],
               params["w5"], params["b5"])

    flops = 2 * padded_B * sum(
        int(params[f"w{i}"].shape[0] * params[f"w{i}"].shape[1]) for i in range(1, 6))
    bytes_accessed = (padded_B * K * 2                    # bf16 input
                      + padded_B * OUT_PAD * 4            # narrow f32 output slab
                      + sum(int(w.size) * w.dtype.itemsize for w in weights))

    out = pl.pallas_call(
        decoder_kernel,
        out_shape=jax.ShapeDtypeStruct((padded_B, OUT_PAD), jnp.float32),
        grid=(padded_B // tm,),
        in_specs=[pl.BlockSpec((tm, K), lambda i: (i, 0))]
                 + [_resident(w) for w in weights],
        out_specs=pl.BlockSpec((tm, OUT_PAD), lambda i: (i, 0)),
        compiler_params=pltpu.CompilerParams(
            dimension_semantics=("parallel",)),
        cost_estimate=pl.CostEstimate(flops=flops, transcendentals=0,
                                      bytes_accessed=bytes_accessed),
    )(z, *weights)

    return out[:B, :OUT_DIM]


def init_params(noise_dim, key, w_dtype=jnp.bfloat16):
    """Deterministic synthetic init (stands in for PyTorch's default Linear init):
    N(0, 0.1) weights stored as (in_features, out_features) in bf16, f32 biases.
    Layer 2/3 are zero-padded 64 -> 128 and fc5 is zero-padded 4 -> 8 so every
    kernel operand keeps friendly lane layouts; numerics are identical to the
    unpadded network."""
    logical = [(256 + noise_dim, 128), (128, 64), (64, 128), (128, 256), (256, OUT_DIM)]
    padded = [(256 + noise_dim, 128), (128, 128), (128, 128), (128, 256), (256, OUT_PAD)]
    params = {}
    keys = jax.random.split(key, 10)
    for i, ((din, dout), (pin, pout)) in enumerate(zip(logical, padded), start=1):
        w = 0.1 * jax.random.normal(keys[2 * i - 2], (din, dout), dtype=jnp.float32)
        b = 0.1 * jax.random.normal(keys[2 * i - 1], (1, dout), dtype=jnp.float32)
        w = jnp.pad(w, ((0, pin - din), (0, pout - dout)))
        b = jnp.pad(b, ((0, 0), (0, pout - dout)))
        params[f"w{i}"] = w.astype(w_dtype)
        params[f"b{i}"] = b.astype(jnp.float32)
    return params


def decoder_ref(z, params):
    """Pure-JAX reference performing the same bf16-in / f32-accumulate math."""
    z = z.astype(jnp.bfloat16)

    def layer(h, w, b, relu):
        y = jnp.dot(h.astype(jnp.bfloat16), w,
                    preferred_element_type=jnp.float32) + b
        return jnp.maximum(y, 0.0) if relu else y

    h = layer(z, params["w1"], params["b1"], True)
    h = layer(h, params["w2"], params["b2"], True)
    h = layer(h, params["w3"], params["b3"], True)
    h = layer(h, params["w4"], params["b4"], True)
    y = layer(h, params["w5"], params["b5"], False)
    return y[:, :OUT_DIM]


if __name__ == "__main__":
    noise_dim = 16
    batch = 200          # non-multiple of the tile -> exercises padding + 2-step grid

    key = jax.random.PRNGKey(0)
    k_params, k_z = jax.random.split(key)
    params = init_params(noise_dim, k_params)
    # bf16 end-to-end: generate z directly in bf16 (no wrapper cast copy).
    z = jax.random.normal(k_z, (batch, 256 + noise_dim), dtype=jnp.bfloat16)

    fwd = jax.jit(lambda zz: decoder_forward(zz, params))
    out = jax.block_until_ready(fwd(z))

    ref = decoder_ref(z, params)
    assert out.shape == (batch, OUT_DIM), out.shape
    max_err = float(jnp.max(jnp.abs(out - ref)))
    assert jnp.allclose(out, ref, atol=5e-3, rtol=2e-2), f"mismatch, max_err={max_err}"

    print("KERNEL_OK")
</pallas_src>

<mosaic_0001>
module attributes {stable_mosaic.version = 11 : i64} {
  func.func @decoder_kernel(%arg0: i32, %arg1: memref<112x272xbf16, #tpu.memory_space<vmem>>, %arg2: memref<272x128xbf16, #tpu.memory_space<vmem>>, %arg3: memref<1x128xf32, #tpu.memory_space<vmem>>, %arg4: memref<128x128xbf16, #tpu.memory_space<vmem>>, %arg5: memref<1x128xf32, #tpu.memory_space<vmem>>, %arg6: memref<128x128xbf16, #tpu.memory_space<vmem>>, %arg7: memref<1x128xf32, #tpu.memory_space<vmem>>, %arg8: memref<128x256xbf16, #tpu.memory_space<vmem>>, %arg9: memref<1x256xf32, #tpu.memory_space<vmem>>, %arg10: memref<256x8xbf16, #tpu.memory_space<vmem>>, %arg11: memref<1x8xf32, #tpu.memory_space<vmem>>, %arg12: memref<112x8xf32, #tpu.memory_space<vmem>>) attributes {dimension_semantics = [#tpu.dimension_semantics<parallel>], iteration_bounds = array<i64: 2>, scalar_prefetch = 0 : i64, scratch_operands = 0 : i64, tpu.core_type = #tpu.core_type<tc>, window_params = [{transform_indices = @transform_0, window_bounds = array<i64: 112, 272>}, {pipeline_mode = #tpu.pipeline_mode<synchronous>, transform_indices = @transform_1, window_bounds = array<i64: 272, 128>}, {pipeline_mode = #tpu.pipeline_mode<synchronous>, transform_indices = @transform_2, window_bounds = array<i64: 1, 128>}, {pipeline_mode = #tpu.pipeline_mode<synchronous>, transform_indices = @transform_3, window_bounds = array<i64: 128, 128>}, {pipeline_mode = #tpu.pipeline_mode<synchronous>, transform_indices = @transform_4, window_bounds = array<i64: 1, 128>}, {pipeline_mode = #tpu.pipeline_mode<synchronous>, transform_indices = @transform_5, window_bounds = array<i64: 128, 128>}, {pipeline_mode = #tpu.pipeline_mode<synchronous>, transform_indices = @transform_6, window_bounds = array<i64: 1, 128>}, {pipeline_mode = #tpu.pipeline_mode<synchronous>, transform_indices = @transform_7, window_bounds = array<i64: 128, 256>}, {pipeline_mode = #tpu.pipeline_mode<synchronous>, transform_indices = @transform_8, window_bounds = array<i64: 1, 256>}, {pipeline_mode = #tpu.pipeline_mode<synchronous>, transform_indices = @transform_9, window_bounds = array<i64: 256, 8>}, {pipeline_mode = #tpu.pipeline_mode<synchronous>, transform_indices = @transform_10, window_bounds = array<i64: 1, 8>}, {transform_indices = @transform_11, window_bounds = array<i64: 112, 8>}]} {
    %c0 = arith.constant 0 : index
    %c0_0 = arith.constant 0 : index
    %0 = vector.load %arg1[%c0, %c0_0] : memref<112x272xbf16, #tpu.memory_space<vmem>>, vector<112x272xbf16>
    %c0_1 = arith.constant 0 : index
    %c0_2 = arith.constant 0 : index
    %1 = vector.load %arg2[%c0_1, %c0_2] : memref<272x128xbf16, #tpu.memory_space<vmem>>, vector<272x128xbf16>
    %cst = arith.constant dense<0.000000e+00> : vector<112x128xf32>
    %2 = tpu.matmul %0, %1, %cst {dimension_numbers = #tpu.dot_dimension_numbers<[1], [0], [0], [1], [0, 0, 1, 1], [], []>} : vector<112x272xbf16>, vector<272x128xbf16>, vector<112x128xf32> -> vector<112x128xf32>
    %c0_3 = arith.constant 0 : index
    %c0_4 = arith.constant 0 : index
    %3 = vector.load %arg3[%c0_3, %c0_4] : memref<1x128xf32, #tpu.memory_space<vmem>>, vector<1x128xf32>
    %4 = vector.broadcast %3 : vector<1x128xf32> to vector<112x128xf32>
    %5 = arith.addf %2, %4 : vector<112x128xf32>
    %cst_5 = arith.constant 0.000000e+00 : f32
    %6 = vector.broadcast %cst_5 : f32 to vector<112x128xf32>
    %7 = arith.maximumf %5, %6 : vector<112x128xf32>
    %8 = arith.truncf %7 : vector<112x128xf32> to vector<112x128xbf16>
    %c0_6 = arith.constant 0 : index
    %c0_7 = arith.constant 0 : index
    %9 = vector.load %arg4[%c0_6, %c0_7] : memref<128x128xbf16, #tpu.memory_space<vmem>>, vector<128x128xbf16>
    %cst_8 = arith.constant dense<0.000000e+00> : vector<112x128xf32>
    %10 = tpu.matmul %8, %9, %cst_8 {dimension_numbers = #tpu.dot_dimension_numbers<[1], [0], [0], [1], [0, 0, 1, 1], [], []>} : vector<112x128xbf16>, vector<128x128xbf16>, vector<112x128xf32> -> vector<112x128xf32>
    %c0_9 = arith.constant 0 : index
    %c0_10 = arith.constant 0 : index
    %11 = vector.load %arg5[%c0_9, %c0_10] : memref<1x128xf32, #tpu.memory_space<vmem>>, vector<1x128xf32>
    %12 = vector.broadcast %11 : vector<1x128xf32> to vector<112x128xf32>
    %13 = arith.addf %10, %12 : vector<112x128xf32>
    %cst_11 = arith.constant 0.000000e+00 : f32
    %14 = vector.broadcast %cst_11 : f32 to vector<112x128xf32>
    %15 = arith.maximumf %13, %14 : vector<112x128xf32>
    %16 = arith.truncf %15 : vector<112x128xf32> to vector<112x128xbf16>
    %c0_12 = arith.constant 0 : index
    %c0_13 = arith.constant 0 : index
    %17 = vector.load %arg6[%c0_12, %c0_13] : memref<128x128xbf16, #tpu.memory_space<vmem>>, vector<128x128xbf16>
    %cst_14 = arith.constant dense<0.000000e+00> : vector<112x128xf32>
    %18 = tpu.matmul %16, %17, %cst_14 {dimension_numbers = #tpu.dot_dimension_numbers<[1], [0], [0], [1], [0, 0, 1, 1], [], []>} : vector<112x128xbf16>, vector<128x128xbf16>, vector<112x128xf32> -> vector<112x128xf32>
    %c0_15 = arith.constant 0 : index
    %c0_16 = arith.constant 0 : index
    %19 = vector.load %arg7[%c0_15, %c0_16] : memref<1x128xf32, #tpu.memory_space<vmem>>, vector<1x128xf32>
    %20 = vector.broadcast %19 : vector<1x128xf32> to vector<112x128xf32>
    %21 = arith.addf %18, %20 : vector<112x128xf32>
    %cst_17 = arith.constant 0.000000e+00 : f32
    %22 = vector.broadcast %cst_17 : f32 to vector<112x128xf32>
    %23 = arith.maximumf %21, %22 : vector<112x128xf32>
    %24 = arith.truncf %23 : vector<112x128xf32> to vector<112x128xbf16>
    %c0_18 = arith.constant 0 : index
    %c0_19 = arith.constant 0 : index
    %25 = vector.load %arg8[%c0_18, %c0_19] : memref<128x256xbf16, #tpu.memory_space<vmem>>, vector<128x256xbf16>
    %cst_20 = arith.constant dense<0.000000e+00> : vector<112x256xf32>
    %26 = tpu.matmul %24, %25, %cst_20 {dimension_numbers = #tpu.dot_dimension_numbers<[1], [0], [0], [1], [0, 0, 1, 1], [], []>} : vector<112x128xbf16>, vector<128x256xbf16>, vector<112x256xf32> -> vector<112x256xf32>
    %c0_21 = arith.constant 0 : index
    %c0_22 = arith.constant 0 : index
    %27 = vector.load %arg9[%c0_21, %c0_22] : memref<1x256xf32, #tpu.memory_space<vmem>>, vector<1x256xf32>
    %28 = vector.broadcast %27 : vector<1x256xf32> to vector<112x256xf32>
    %29 = arith.addf %26, %28 : vector<112x256xf32>
    %cst_23 = arith.constant 0.000000e+00 : f32
    %30 = vector.broadcast %cst_23 : f32 to vector<112x256xf32>
    %31 = arith.maximumf %29, %30 : vector<112x256xf32>
    %32 = arith.truncf %31 : vector<112x256xf32> to vector<112x256xbf16>
    %c0_24 = arith.constant 0 : index
    %c0_25 = arith.constant 0 : index
    %33 = vector.load %arg10[%c0_24, %c0_25] : memref<256x8xbf16, #tpu.memory_space<vmem>>, vector<256x8xbf16>
    %cst_26 = arith.constant dense<0.000000e+00> : vector<112x8xf32>
    %34 = tpu.matmul %32, %33, %cst_26 {dimension_numbers = #tpu.dot_dimension_numbers<[1], [0], [0], [1], [0, 0, 1, 1], [], []>} : vector<112x256xbf16>, vector<256x8xbf16>, vector<112x8xf32> -> vector<112x8xf32>
    %c0_27 = arith.constant 0 : index
    %c0_28 = arith.constant 0 : index
    %35 = vector.load %arg11[%c0_27, %c0_28] : memref<1x8xf32, #tpu.memory_space<vmem>>, vector<1x8xf32>
    %36 = vector.broadcast %35 : vector<1x8xf32> to vector<112x8xf32>
    %37 = arith.addf %34, %36 : vector<112x8xf32>
    %c0_29 = arith.constant 0 : index
    %c0_30 = arith.constant 0 : index
    %38 = vector.load %arg12[%c0_29, %c0_30] : memref<112x8xf32, #tpu.memory_space<vmem>>, vector<112x8xf32>
    tpu.vector_store %arg12[%c0_29, %c0_30], %37 {strides = array<i32>} : memref<112x8xf32, #tpu.memory_space<vmem>>, vector<112x8xf32>,
    return
  }
  func.func @transform_0(%arg0: i32) -> (i32, i32) {
    %c0_i32 = arith.constant 0 : i32
    %c0_i32_0 = arith.constant 0 : i32
    return %arg0, %c0_i32 : i32, i32
  }
  func.func @transform_1(%arg0: i32) -> (i32, i32) {
    %c0_i32 = arith.constant 0 : i32
    %c0_i32_0 = arith.constant 0 : i32
    %c0_i32_1 = arith.constant 0 : i32
    return %c0_i32, %c0_i32_0 : i32, i32
  }
  func.func @transform_2(%arg0: i32) -> (i32, i32) {
    %c0_i32 = arith.constant 0 : i32
    %c0_i32_0 = arith.constant 0 : i32
    %c0_i32_1 = arith.constant 0 : i32
    return %c0_i32, %c0_i32_0 : i32, i32
  }
  func.func @transform_3(%arg0: i32) -> (i32, i32) {
    %c0_i32 = arith.constant 0 : i32
    %c0_i32_0 = arith.constant 0 : i32
    %c0_i32_1 = arith.constant 0 : i32
    return %c0_i32, %c0_i32_0 : i32, i32
  }
  func.func @transform_4(%arg0: i32) -> (i32, i32) {
    %c0_i32 = arith.constant 0 : i32
    %c0_i32_0 = arith.constant 0 : i32
    %c0_i32_1 = arith.constant 0 : i32
    return %c0_i32, %c0_i32_0 : i32, i32
  }
  func.func @transform_5(%arg0: i32) -> (i32, i32) {
    %c0_i32 = arith.constant 0 : i32
    %c0_i32_0 = arith.constant 0 : i32
    %c0_i32_1 = arith.constant 0 : i32
    return %c0_i32, %c0_i32_0 : i32, i32
  }
  func.func @transform_6(%arg0: i32) -> (i32, i32) {
    %c0_i32 = arith.constant 0 : i32
    %c0_i32_0 = arith.constant 0 : i32
    %c0_i32_1 = arith.constant 0 : i32
    return %c0_i32, %c0_i32_0 : i32, i32
  }
  func.func @transform_7(%arg0: i32) -> (i32, i32) {
    %c0_i32 = arith.constant 0 : i32
    %c0_i32_0 = arith.constant 0 : i32
    %c0_i32_1 = arith.constant 0 : i32
    return %c0_i32, %c0_i32_0 : i32, i32
  }
  func.func @transform_8(%arg0: i32) -> (i32, i32) {
    %c0_i32 = arith.constant 0 : i32
    %c0_i32_0 = arith.constant 0 : i32
    %c0_i32_1 = arith.constant 0 : i32
    return %c0_i32, %c0_i32_0 : i32, i32
  }
  func.func @transform_9(%arg0: i32) -> (i32, i32) {
    %c0_i32 = arith.constant 0 : i32
    %c0_i32_0 = arith.constant 0 : i32
    %c0_i32_1 = arith.constant 0 : i32
    return %c0_i32, %c0_i32_0 : i32, i32
  }
  func.func @transform_10(%arg0: i32) -> (i32, i32) {
    %c0_i32 = arith.constant 0 : i32
    %c0_i32_0 = arith.constant 0 : i32
    %c0_i32_1 = arith.constant 0 : i32
    return %c0_i32, %c0_i32_0 : i32, i32
  }
  func.func @transform_11(%arg0: i32) -> (i32, i32) {
    %c0_i32 = arith.constant 0 : i32
    %c0_i32_0 = arith.constant 0 : i32
    return %arg0, %c0_i32 : i32, i32
  }
}

</mosaic_0001>

<bundles_post_ra>
// kernel: _lambda_.1
= control target key start
LH: loop header
LB: loop body
LE: loop exit
PB: predicated region body
PF: predicated region fallthrough
CT: control target
= control target key end

     0   :  { %s2161_s17 = smov 0   ;;  %s2650_s0 = inlined_call_operand.vmem [shape: bf16[224,272], index: 0, kind: input, shape index: {}]   ;;  %s2651_s1 = inlined_call_operand.vmem [shape: bf16[272,128], index: 1, kind: input, shape index: {}]   ;;  %s2652_s2 = inlined_call_operand.vmem [shape: f32[1,128], index: 2, kind: input, shape index: {}]   ;;  %s2653_s3 = inlined_call_operand.vmem [shape: bf16[128,128], index: 3, kind: input, shape index: {}]   ;;  %s2654_s4 = inlined_call_operand.vmem [shape: f32[1,128], index: 4, kind: input, shape index: {}]   ;;  %s2655_s5 = inlined_call_operand.vmem [shape: bf16[128,128], index: 5, kind: input, shape index: {}]   ;;  %s2656_s6 = inlined_call_operand.vmem [shape: f32[1,128], index: 6, kind: input, shape index: {}]   ;;  %s2657_s7 = inlined_call_operand.vmem [shape: bf16[128,256], index: 7, kind: input, shape index: {}]   ;;  %s2658_s8 = inlined_call_operand.vmem [shape: f32[1,256], index: 8, kind: input, shape index: {}]   ;;  %s2659_s9 = inlined_call_operand.vmem [shape: bf16[256,8], index: 9, kind: input, shape index: {}]   ;;  %s2660_s10 = inlined_call_operand.vmem [shape: f32[1,8], index: 10, kind: input, shape index: {}]   ;;  %s2661_s11 = inlined_call_operand.vmem [shape: f32[224,8], index: 11, kind: output, shape index: {}]  }
   0x1 LB: > { %s1631_s18 = sadd.s32 4294967295, %s2099_s17   ;;  %p1635_p0 = scmp.ge.s32.totalorder %s2099_s17, 1  ;;  %s2099_s17 = sphi %s2161_s17, %s21_s17  }
   0x2   : > { %p339_p1 = scmp.lt.s32.totalorder %s2099_s17, 3 }
   0x4   : > { %p340_p2 = pnand %p1635_p0, %p339_p1 }
   0x5   : > { %s380_s14 = smul.u32 (!%p340_p2), 14, %s1631_s18 }
   0x6   : > { %343 = sbr.rel (%p340_p2) target bundleno = 968 (0x3c8), region = 64 }
   0x7   : > { %p381_p3 = scmp.lt.s32.totalorder (!%p340_p2), %s380_s14, 27 }
   0xb   : > { %v2019_v0 = vld [vmem:[%s2651_s1 + $0x38] sm:$0xff]  ;;  %v2018_v2 = vld [vmem:[%s2651_s1 + $0x30] sm:$0xff]  ;;  %v2017_v4 = vld [vmem:[%s2651_s1 + $0x28] sm:$0xff]  ;;  %s2663_s14 = smov (!%p381_p3, %s380_s14), 27  ;;  %vm667_vm0 = vcmask 130048   ;;  %vm1560_vm1 = vcmask 64512  }
   0xc   : > { %v2027_v1 = vld [vmem:[%s2651_s1 + $0x78] sm:$0xff]  ;;  %689 = vmatpush.bf16.msra.mxu0 %v2019_v0  ;;  %v2026_v3 = vld [vmem:[%s2651_s1 + $0x70] sm:$0xff]  ;;  %v2028_v5 = vld [vmem:[%s2651_s1 + $0x80] sm:$0xff]  ;;  %s2080_s28 = smul.u32 12, %s2663_s14  ;;  %s1637_s25 = sshll.u32 %s2663_s14, 3 }
   0xd   : > { %733 = vmatpush.bf16.msra.mxu1 %v2027_v1  ;;  %v2025_v6 = vld [vmem:[%s2651_s1 + $0x68] sm:$0xff]  ;;  %2078 = vmatpush.bf16.msra.mxu2 %v2028_v5  ;;  %v2016_v7 = vld [vmem:[%s2651_s1 + $0x20] sm:$0xff]  ;;  %v2015_v9 = vld [vmem:[%s2651_s1 + $0x18] sm:$0xff] }
   0xe   : > { %2079 = vmatpush.bf16.msra.mxu3 %v2028_v5  ;;  %v2024_v8 = vld [vmem:[%s2651_s1 + $0x60] sm:$0xff]  ;;  %v2023_v10 = vld [vmem:[%s2651_s1 + $0x58] sm:$0xff]  ;;  %v2014_v11 = vld [vmem:[%s2651_s1 + $0x10] sm:$0xff]  ;;  %s2220_s19 = scalar_lea.vmem %s2650_s0, %s2080_s28  ;;  %s2604_s28 = scalar_lea.vmem %s2661_s11, %s1637_s25 }
   0xf   : > { %v2022_v12 = vld [vmem:[%s2651_s1 + $0x50] sm:$0xff]  ;;  %v2013_v13 = vld [vmem:[%s2651_s1 + $0x8] sm:$0xff]  ;;  %v2012_v15 = vld [vmem:[%s2651_s1] sm:$0xff] }
  0x10   : > { %690 = vmatpush.bf16.msra.mxu0 %v2018_v2  ;;  %v2021_v14 = vld [vmem:[%s2651_s1 + $0x48] sm:$0xff]  ;;  %v2020_v16 = vld [vmem:[%s2651_s1 + $0x40] sm:$0xff]  ;;  %v1642_v20 = vld [vmem:[%s2220_s19 + $0xc] sm:$0xf0] }
  0x11   : > { %734 = vmatpush.bf16.msra.mxu1 %v2026_v3  ;;  %v1640_v17 = vld [vmem:[%s2220_s19] sm:$0xf]  ;;  %v1992_v18 = vld [vmem:[%s2220_s19 + $0x8] sm:$0xf0]  ;;  %v1991_v19 = vld [vmem:[%s2220_s19 + $0x4] sm:$0xf] }
  0x12   : > { %v1641_v21 = vor.u32 %v1992_v18, %v1640_v17  ;;  %v1645_v22 = vor.u32 %v1991_v19, %v1642_v20  ;;  %v1684_v23 = vld [vmem:[%s2220_s19 + $0x50] sm:$0xf]  ;;  %v2002_v24 = vld [vmem:[%s2220_s19 + $0x58] sm:$0xf0]  ;;  %v1652_v26 = vld [vmem:[%s2220_s19 + $0x18] sm:$0xf] }
  0x13   : > { %v1685_v25 = vor.u32 %v2002_v24, %v1684_v23  ;;  %v1995_v27 = vld [vmem:[%s2220_s19 + $0x20] sm:$0xf0]  ;;  %v1994_v28 = vld [vmem:[%s2220_s19 + $0x1c] sm:$0xf]  ;;  %v1654_v29 = vld [vmem:[%s2220_s19 + $0x24] sm:$0xf0] }
  0x14   : > { %691 = vmatpush.bf16.msra.mxu0 %v2017_v4  ;;  %v1653_v30 = vor.u32 %v1995_v27, %v1652_v26  ;;  %v1657_v31 = vor.u32 %v1994_v28, %v1654_v29  ;;  %v1696_v32 = vld [vmem:[%s2220_s19 + $0x68] sm:$0xf]  ;;  %v2005_v33 = vld [vmem:[%s2220_s19 + $0x70] sm:$0xf0]  ;;  %v1664_v35 = vld [vmem:[%s2220_s19 + $0x30] sm:$0xf] }
  0x15   : > { %735 = vmatpush.bf16.msra.mxu1 %v2025_v6  ;;  %1793 = vmatmul.msk.bf16.vlgmr.msra.gmra.mxu2 %vm667_vm0, %v1685_v25  ;;  %v1697_v34 = vor.u32 %v2005_v33, %v1696_v32  ;;  %v1998_v36 = vld [vmem:[%s2220_s19 + $0x38] sm:$0xf0]  ;;  %v1997_v37 = vld [vmem:[%s2220_s19 + $0x34] sm:$0xf]  ;;  %v1666_v38 = vld [vmem:[%s2220_s19 + $0x3c] sm:$0xf0] }
  0x16   : > { %v1665_v39 = vor.u32 %v1998_v36, %v1664_v35  ;;  %v1669_v40 = vor.u32 %v1997_v37, %v1666_v38  ;;  %v1708_v41 = vld [vmem:[%s2220_s19 + $0x80] sm:$0xf]  ;;  %v2008_v42 = vld [vmem:[%s2220_s19 + $0x88] sm:$0xf0]  ;;  %v1676_v44 = vld [vmem:[%s2220_s19 + $0x48] sm:$0xf] }
  0x17   : > { %v1709_v43 = vor.u32 %v2008_v42, %v1708_v41  ;;  %v2001_v45 = vld [vmem:[%s2220_s19 + $0x50] sm:$0xf0]  ;;  %v2000_v46 = vld [vmem:[%s2220_s19 + $0x4c] sm:$0xf]  ;;  %v1678_v47 = vld [vmem:[%s2220_s19 + $0x54] sm:$0xf0] }
  0x18   : > { %692 = vmatpush.bf16.msra.mxu0 %v2016_v7  ;;  %v1677_v48 = vor.u32 %v2001_v45, %v1676_v44  ;;  %v1681_v49 = vor.u32 %v2000_v46, %v1678_v47  ;;  %v1720_v50 = vld [vmem:[%s2220_s19 + $0x98] sm:$0xf]  ;;  %v2011_v51 = vld [vmem:[%s2220_s19 + $0xa0] sm:$0xf0]  ;;  %v1688_v53 = vld [vmem:[%s2220_s19 + $0x60] sm:$0xf] }
  0x19   : > { %736 = vmatpush.bf16.msra.mxu1 %v2024_v8  ;;  %1795 = vmatmul.msk.bf16.vlgmr.msra.gmra.mxu3 %vm667_vm0, %v1709_v43  ;;  %v1721_v52 = vor.u32 %v2011_v51, %v1720_v50  ;;  %v2004_v54 = vld [vmem:[%s2220_s19 + $0x68] sm:$0xf0]  ;;  %v2003_v55 = vld [vmem:[%s2220_s19 + $0x64] sm:$0xf]  ;;  %v1690_v56 = vld [vmem:[%s2220_s19 + $0x6c] sm:$0xf0] }
  0x1a   : > { %v1689_v57 = vor.u32 %v2004_v54, %v1688_v53  ;;  %v1693_v58 = vor.u32 %v2003_v55, %v1690_v56  ;;  %v1700_v59 = vld [vmem:[%s2220_s19 + $0x78] sm:$0xf]  ;;  %v2007_v60 = vld [vmem:[%s2220_s19 + $0x80] sm:$0xf0]  ;;  %v2006_v61 = vld [vmem:[%s2220_s19 + $0x7c] sm:$0xf] }
  0x1b   : > { %v1702_v62 = vld [vmem:[%s2220_s19 + $0x84] sm:$0xf0]  ;;  %v1701_v63 = vor.u32 %v2007_v60, %v1700_v59  ;;  %v1712_v1 = vld [vmem:[%s2220_s19 + $0x90] sm:$0xf]  ;;  %v2010_v2 = vld [vmem:[%s2220_s19 + $0x98] sm:$0xf0] }
  0x1c   : > { %693 = vmatpush.bf16.msra.mxu0 %v2015_v9  ;;  %v1705_v0 = vor.u32 %v2006_v61, %v1702_v62  ;;  %v2009_v3 = vld [vmem:[%s2220_s19 + $0x94] sm:$0xf]  ;;  %v1714_v4 = vld [vmem:[%s2220_s19 + $0x9c] sm:$0xf0]  ;;  %v1648_v7 = vld [vmem:[%s2220_s19 + $0x8] sm:$0xf] }
  0x1d   : > { %737 = vmatpush.bf16.msra.mxu1 %v2023_v10  ;;  %v1717_v6 = vor.u32 %v2009_v3, %v1714_v4  ;;  %v1993_v8 = vld [vmem:[%s2220_s19 + $0x10] sm:$0xf0]  ;;  %v1672_v9 = vld [vmem:[%s2220_s19 + $0x38] sm:$0xf]  ;;  %v1999_v10 = vld [vmem:[%s2220_s19 + $0x40] sm:$0xf0] }
  0x1e   : > { %v2036_v47 = vld [vmem:[%s2653_s3 + $0x38] sm:$0xff]  ;;  %v2035_v55 = vld [vmem:[%s2653_s3 + $0x30] sm:$0xff]  ;;  %v2033_v62 = vld [vmem:[%s2653_s3 + $0x20] sm:$0xff] }
  0x1f   : > { %910 = vmatpush.bf16.msrb.mxu3 %v2036_v47  ;;  %v2032_v3 = vld [vmem:[%s2653_s3 + $0x18] sm:$0xff] }
  0x20   : > { %694 = vmatpush.bf16.msra.mxu0 %v2014_v11  ;;  %v1649_v11 = vor.u32 %v1993_v8, %v1648_v7 }
  0x21   : > { %738 = vmatpush.bf16.msra.mxu1 %v2022_v12  ;;  %v1673_v12 = vor.u32 %v1999_v10, %v1672_v9  ;;  %v2031_v10 = vld [vmem:[%s2653_s3 + $0x10] sm:$0xff] }
  0x23   : > { %911 = vmatpush.bf16.msrb.mxu3 %v2035_v55 }
  0x24   : > { %695 = vmatpush.bf16.msra.mxu0 %v2013_v13  ;;  %v1660_v13 = vld [vmem:[%s2220_s19 + $0x20] sm:$0xf] }
  0x25   : > { %739 = vmatpush.bf16.msra.mxu1 %v2021_v14  ;;  %1794 = vmatmul.msk.bf16.gmra.mxu2 %vm667_vm0, %v1697_v34  ;;  %v1996_v14 = vld [vmem:[%s2220_s19 + $0x28] sm:$0xf0] }
  0x28   : > { %696 = vmatpush.bf16.msra.mxu0 %v2012_v15  ;;  %v2279_v15 = vld [vmem:[%s2652_s2] ss:$0 sm:$0xff] }
  0x29   : > { %740 = vmatpush.bf16.msra.mxu1 %v2020_v16  ;;  %1796 = vmatmul.msk.bf16.gmra.mxu3 %vm667_vm0, %v1721_v52  ;;  %v1661_v16 = vor.u32 %v1996_v14, %v1660_v13 }
  0x2b   : > { %697 = vmatmul.bf16.vlgmr.msra.gmra.mxu0 %v1641_v21 }
  0x2c   : > { %784 = vmatpush.bf16.msrb.mxu0 %v2028_v5  ;;  %741 = vmatmul.bf16.vlgmr.msra.gmra.mxu1 %v1645_v22 }
  0x2d   : > { %2077 = vmatpush.bf16.msrb.mxu1 %v2028_v5  ;;  %v1713_v5 = vor.u32 %v2010_v2, %v1712_v1 }
  0x3b   : > { %702 = vmatmul.bf16.gmra.mxu0 %v1653_v30 }
  0x3c   : > { %746 = vmatmul.bf16.gmra.mxu1 %v1657_v31 }
  0x4b   : > { %707 = vmatmul.bf16.gmra.mxu0 %v1665_v39 }
  0x4c   : > { %751 = vmatmul.bf16.gmra.mxu1 %v1669_v40 }
  0x5b   : > { %712 = vmatmul.bf16.gmra.mxu0 %v1677_v48 }
  0x5c   : > { %756 = vmatmul.bf16.gmra.mxu1 %v1681_v49 }
  0x6b   : > { %717 = vmatmul.bf16.gmra.mxu0 %v1689_v57  ;;  %v2034_v57 = vld [vmem:[%s2653_s3 + $0x28] sm:$0xff] }
  0x6c   : > { %761 = vmatmul.bf16.gmra.mxu1 %v1693_v58  ;;  %912 = vmatpush.bf16.msrb.mxu3 %v2034_v57 }
  0x70   : > { %913 = vmatpush.bf16.msrb.mxu3 %v2033_v62 }
  0x74   : > { %914 = vmatpush.bf16.msrb.mxu3 %v2032_v3 }
  0x78   : > { %915 = vmatpush.bf16.msrb.mxu3 %v2031_v10 }
  0x7b   : > { %722 = vmatmul.bf16.gmra.mxu0 %v1701_v63 }
  0x7c   : > { %766 = vmatmul.bf16.gmra.mxu1 %v1705_v0 }
  0x8b   : > { %727 = vmatmul.bf16.gmra.mxu0 %v1713_v5 }
  0x8c   : > { %771 = vmatmul.bf16.gmra.mxu1 %v1717_v6 }
  0x98   : > { %v801_v35 = vpop.f32.mrf.mxu2 }
  0x9b   : > { %1790 = vmatmul.msk.bf16.vlgmr.msrb.gmra.mxu0 %vm667_vm0, %v1649_v11 }
  0x9c   : > { %1792 = vmatmul.msk.bf16.vlgmr.msrb.gmra.mxu1 %vm667_vm0, %v1673_v12  ;;  %v811_v1 = vpop.f32.mrf.mxu3  ;;  %v2030_v12 = vld [vmem:[%s2653_s3 + $0x8] sm:$0xff] }
  0x9d   : > { %916 = vmatpush.bf16.msrb.mxu3 %v2030_v12 }
  0xa0   : > { %v803_v40 = vpop.f32.mrf.mxu2 }
  0xa4   : > { %v813_v13 = vpop.f32.mrf.mxu3 }
  0xa8   : > { %v698_v17 = vpop.f32.mrf.mxu0  ;;  %v806_v50 = vpop.f32.mrf.mxu2 }
  0xa9   : > { %v742_v18 = vpop.f32.mrf.mxu1  ;;  %v699_v19 = vadd.f32 %v2279_v15, %v698_v17 }
  0xab   : > { %v2282_v20 = vadd.f32 %v742_v18, %v699_v19  ;;  %1791 = vmatmul.msk.bf16.gmra.mxu0 %vm667_vm0, %v1661_v16  ;;  %v2029_v18 = vld [vmem:[%s2653_s3] sm:$0xff] }
  0xac   : > { %917 = vmatpush.bf16.msrb.mxu3 %v2029_v18 }
  0xb0   : > { %v2285_v21 = vpop.f32.mrf.mxu0  ;;  %v808_v61 = vpop.f32.mrf.mxu2 }
  0xb1   : > { %v2287_v22 = vpop.f32.mrf.mxu1 }
  0xb8   : > { %v703_v23 = vpop.f32.mrf.mxu0 }
  0xb9   : > { %v747_v24 = vpop.f32.mrf.mxu1  ;;  %v704_v25 = vadd.f32 %v2279_v15, %v703_v23 }
  0xbb   : > { %v2290_v26 = vadd.f32 %v747_v24, %v704_v25 }
  0xc0   : > { %v2292_v27 = vpop.f32.mrf.mxu0 }
  0xc1   : > { %v2294_v28 = vpop.f32.mrf.mxu1 }
  0xc8   : > { %v708_v29 = vpop.f32.mrf.mxu0 }
  0xc9   : > { %v752_v30 = vpop.f32.mrf.mxu1  ;;  %v709_v31 = vadd.f32 %v2279_v15, %v708_v29 }
  0xcb   : > { %v2297_v32 = vadd.f32 %v752_v30, %v709_v31  ;;  %v816_v30 = vpop.f32.mrf.mxu3 }
  0xd0   : > { %v2299_v33 = vpop.f32.mrf.mxu0 }
  0xd1   : > { %v2301_v34 = vpop.f32.mrf.mxu1 }
  0xd8   : > { %v713_v36 = vpop.f32.mrf.mxu0 }
  0xd9   : > { %v757_v37 = vpop.f32.mrf.mxu1  ;;  %v714_v38 = vadd.f32 %v2279_v15, %v713_v36 }
  0xdb   : > { %v758_v39 = vadd.f32 %v757_v37, %v714_v38 }
  0xdd   : > { %v802_v44 = vadd.f32 %v801_v35, %v758_v39 }
  0xdf   : > { %v827_v48 = vmax.f32 %v802_v44, 0.0 }
  0xe0   : > { %v715_v41 = vpop.f32.mrf.mxu0 }
  0xe1   : > { %v759_v42 = vpop.f32.mrf.mxu1  ;;  %v716_v43 = vadd.f32 %v2279_v15, %v715_v41 }
  0xe3   : > { %v760_v45 = vadd.f32 %v759_v42, %v716_v43  ;;  %v818_v42 = vpop.f32.mrf.mxu3 }
  0xe5   : > { %v804_v46 = vadd.f32 %v803_v40, %v760_v45 }
  0xe7   : > { %v828_v49 = vmax.f32 %v804_v46, 0.0 }
  0xe8   : > { %v718_v51 = vpop.f32.mrf.mxu0 }
  0xe9   : > { %v762_v52 = vpop.f32.mrf.mxu1  ;;  %v719_v53 = vadd.f32 %v2279_v15, %v718_v51  ;;  %v2309_v54 = vpack.c.bf16 %v828_v49, %v827_v48 }
  0xeb   : > { %v763_v56 = vadd.f32 %v762_v52, %v719_v53 }
  0xed   : > { %v807_v63 = vadd.f32 %v806_v50, %v763_v56  ;;  %v701_v50 = vadd.f32 %v2279_v15, %v2285_v21 }
  0xef   : > { %v829_v4 = vmax.f32 %v807_v63, 0.0  ;;  %v745_v51 = vadd.f32 %v2287_v22, %v701_v50 }
  0xf0   : > { %v720_v58 = vpop.f32.mrf.mxu0 }
  0xf1   : > { %v764_v59 = vpop.f32.mrf.mxu1  ;;  %v721_v60 = vadd.f32 %v2279_v15, %v720_v58 }
  0xf3   : > { %v765_v0 = vadd.f32 %v764_v59, %v721_v60  ;;  %v706_v60 = vadd.f32 %v2279_v15, %v2292_v27 }
  0xf5   : > { %v809_v2 = vadd.f32 %v808_v61, %v765_v0  ;;  %v750_v61 = vadd.f32 %v2294_v28, %v706_v60 }
  0xf7   : > { %v830_v5 = vmax.f32 %v809_v2, 0.0  ;;  %v711_v2 = vadd.f32 %v2279_v15, %v2299_v33  ;;  %v2041_v33 = vld [vmem:[%s2655_s5 + $0x20] sm:$0xff] }
  0xf8   : > { %v723_v6 = vpop.f32.mrf.mxu0 }
  0xf9   : > { %v767_v7 = vpop.f32.mrf.mxu1  ;;  %v724_v8 = vadd.f32 %v2279_v15, %v723_v6  ;;  %v2325_v9 = vpack.c.bf16 %v830_v5, %v829_v4  ;;  %v755_v4 = vadd.f32 %v2301_v34, %v711_v2  ;;  %v2040_v34 = vld [vmem:[%s2655_s5 + $0x18] sm:$0xff] }
  0xfb   : > { %v768_v11 = vadd.f32 %v767_v7, %v724_v8  ;;  %v2038_v8 = vld [vmem:[%s2655_s5 + $0x8] sm:$0xff] }
  0xfd   : > { %v812_v19 = vadd.f32 %v811_v1, %v768_v11  ;;  %v2380_v11 = vld [vmem:[%s2654_s4] ss:$0 sm:$0xff] }
  0xff   : > { %v831_v25 = vmax.f32 %v812_v19, 0.0 }
 0x100   : > { %v725_v14 = vpop.f32.mrf.mxu0 }
 0x101   : > { %v769_v16 = vpop.f32.mrf.mxu1  ;;  %v726_v17 = vadd.f32 %v2279_v15, %v725_v14 }
 0x103   : > { %v770_v23 = vadd.f32 %v769_v16, %v726_v17 }
 0x105   : > { %v814_v24 = vadd.f32 %v813_v13, %v770_v23 }
 0x107   : > { %v832_v29 = vmax.f32 %v814_v24, 0.0 }
 0x108   : > { %v728_v31 = vpop.f32.mrf.mxu0 }
 0x109   : > { %v772_v35 = vpop.f32.mrf.mxu1  ;;  %v729_v36 = vadd.f32 %v2279_v15, %v728_v31  ;;  %v840_v37 = vpack.c.bf16 %v832_v29, %v831_v25 }
 0x10b   : > { %v773_v38 = vadd.f32 %v772_v35, %v729_v36 }
 0x10d   : > { %v817_v43 = vadd.f32 %v816_v30, %v773_v38 }
 0x10f   : > { %v833_v46 = vmax.f32 %v817_v43, 0.0 }
 0x110   : > { %v730_v39 = vpop.f32.mrf.mxu0 }
 0x111   : > { %v731_v40 = vadd.f32 %v2279_v15, %v730_v39  ;;  %v774_v41 = vpop.f32.mrf.mxu1  ;;  %v2043_v15 = vld [vmem:[%s2655_s5 + $0x30] sm:$0xff] }
 0x113   : > { %v775_v44 = vadd.f32 %v774_v41, %v731_v40 }
 0x115   : > { %v819_v45 = vadd.f32 %v818_v42, %v775_v44 }
 0x117   : > { %v834_v47 = vmax.f32 %v819_v45, 0.0 }
 0x118   : > { %v786_v48 = vpop.f32.mrf.mxu0 }
 0x119   : > { %v841_v49 = vpack.c.bf16 %v834_v47, %v833_v46  ;;  %v787_v52 = vadd.f32 %v786_v48, %v2282_v20  ;;  %v796_v63 = vpop.f32.mrf.mxu1 }
 0x11a   : > { %v797_v27 = vadd.f32 %v796_v63, %v2297_v32  ;;  %v2042_v32 = vld [vmem:[%s2655_s5 + $0x28] sm:$0xff]  ;;  %v1911_v63 = vld [vmem:[%s2657_s7 + $0x60] sm:$0xf] }
 0x11b   : > { %v821_v56 = vmax.f32 %v787_v52, 0.0 }
 0x11c   : > { %v825_v28 = vmax.f32 %v797_v27, 0.0  ;;  %v1905_v27 = vld [vmem:[%s2657_s7 + $0x58] sm:$0xf0] }
 0x120   : > { %v788_v53 = vpop.f32.mrf.mxu0 }
 0x121   : > { %v789_v55 = vadd.f32 %v788_v53, %v745_v51  ;;  %v798_v3 = vpop.f32.mrf.mxu1 }
 0x122   : > { %v799_v5 = vadd.f32 %v798_v3, %v755_v4  ;;  %v1903_v3 = vld [vmem:[%s2657_s7 + $0x50] sm:$0xf]  ;;  %v2056_v4 = vld [vmem:[%s2657_s7 + $0x54] sm:$0xf0] }
 0x123   : > { %v822_v57 = vmax.f32 %v789_v55, 0.0 }
 0x124   : > { %v826_v6 = vmax.f32 %v799_v5, 0.0  ;;  %v2055_v5 = vld [vmem:[%s2657_s7 + $0x54] sm:$0xf] }
 0x125   : > { %v835_v58 = vpack.c.bf16 %v822_v57, %v821_v56  ;;  %v1919_v57 = vld [vmem:[%s2657_s7 + $0x70] sm:$0xf] }
 0x126   : > { %v837_v7 = vpack.c.bf16 %v826_v6, %v825_v28  ;;  %v1904_v6 = vor.u32 %v2056_v4, %v1903_v3 }
 0x127   : > { %918 = vmatmul.bf16.vlgmr.msrb.gmra.mxu3 %v835_v58  ;;  %v2060_v58 = vld [vmem:[%s2657_s7 + $0x74] sm:$0xf0] }
 0x128   : > { %v791_v59 = vpop.f32.mrf.mxu0 }
 0x129   : > { %v792_v62 = vadd.f32 %v791_v59, %v2290_v26  ;;  %v2044_v26 = vld [vmem:[%s2655_s5 + $0x38] sm:$0xff]  ;;  %v2059_v59 = vld [vmem:[%s2657_s7 + $0x74] sm:$0xf] }
 0x12a   : > { %1043 = vmatpush.bf16.msrb.mxu2 %v2044_v26  ;;  %v1895_v26 = vld [vmem:[%s2657_s7 + $0x40] sm:$0xf] }
 0x12b   : > { %v823_v22 = vmax.f32 %v792_v62, 0.0  ;;  %v1921_v62 = vld [vmem:[%s2657_s7 + $0x78] sm:$0xf0] }
 0x12e   : > { %1044 = vmatpush.bf16.msrb.mxu2 %v2043_v15  ;;  %v2054_v15 = vld [vmem:[%s2657_s7 + $0x44] sm:$0xf0] }
 0x130   : > { %v793_v21 = vpop.f32.mrf.mxu0 }
 0x131   : > { %v794_v0 = vadd.f32 %v793_v21, %v750_v61  ;;  %v1920_v61 = vor.u32 %v2060_v58, %v1919_v57  ;;  %v2058_v21 = vld [vmem:[%s2657_s7 + $0x64] sm:$0xf0] }
 0x132   : > { %1045 = vmatpush.bf16.msrb.mxu2 %v2042_v32 }
 0x133   : > { %v824_v1 = vmax.f32 %v794_v0, 0.0  ;;  %v1924_v0 = vor.u32 %v2059_v59, %v1921_v62  ;;  %1210 = vmatpush.bf16.msra.mxu0 %v1920_v61  ;;  %v2068_v62 = vld [vmem:[%s2659_s9 + $0x38] sm:$0xff] }
 0x134   : > { %1472 = vmatpush.bf16.msra.mxu3 %v2068_v62 }
 0x135   : > { %v836_v20 = vpack.c.bf16 %v824_v1, %v823_v22  ;;  %v2057_v22 = vld [vmem:[%s2657_s7 + $0x64] sm:$0xf]  ;;  %v1913_v1 = vld [vmem:[%s2657_s7 + $0x68] sm:$0xf0]  ;;  %1254 = vmatpush.bf16.msra.mxu1 %v1924_v0 }
 0x136   : > { %1046 = vmatpush.bf16.msrb.mxu2 %v2041_v33  ;;  %v1916_v2 = vor.u32 %v2057_v22, %v1913_v1  ;;  %v2053_v33 = vld [vmem:[%s2657_s7 + $0x44] sm:$0xf] }
 0x137   : > { %923 = vmatmul.bf16.gmra.mxu3 %v836_v20  ;;  %v1912_v20 = vor.u32 %v2058_v21, %v1911_v63  ;;  %v2076_v63 = vld [vmem:[%s2659_s9 + $0x78] sm:$0xff] }
 0x139   : > { %1211 = vmatpush.bf16.msra.mxu0 %v1912_v20  ;;  %1255 = vmatpush.bf16.msra.mxu1 %v1916_v2 }
 0x13a   : > { %1047 = vmatpush.bf16.msrb.mxu2 %v2040_v34  ;;  %v1897_v34 = vld [vmem:[%s2657_s7 + $0x48] sm:$0xf0] }
 0x13d   : > { %1212 = vmatpush.bf16.msra.mxu0 %v1904_v6 }
 0x147   : > { %928 = vmatmul.bf16.gmra.mxu3 %v837_v7  ;;  %v1908_v7 = vor.u32 %v2055_v5, %v1905_v27  ;;  %v2067_v5 = vld [vmem:[%s2659_s9 + $0x30] sm:$0xff] }
 0x148   : > { %v2075_v27 = vld [vmem:[%s2659_s9 + $0x70] sm:$0xff]  ;;  %1473 = vmatpush.bf16.msra.mxu3 %v2067_v5 }
 0x149   : > { %1256 = vmatpush.bf16.msra.mxu1 %v1908_v7 }
 0x157   : > { %933 = vmatmul.bf16.gmra.mxu3 %v2309_v54  ;;  %v2039_v54 = vld [vmem:[%s2655_s5 + $0x10] sm:$0xff] }
 0x158   : > { %1048 = vmatpush.bf16.msrb.mxu2 %v2039_v54 }
 0x15c   : > { %1049 = vmatpush.bf16.msrb.mxu2 %v2038_v8  ;;  %v1896_v8 = vor.u32 %v2054_v15, %v1895_v26 }
 0x15e   : > { %1213 = vmatpush.bf16.msra.mxu0 %v1896_v8 }
 0x167   : > { %938 = vmatmul.bf16.gmra.mxu3 %v2325_v9  ;;  %v2037_v9 = vld [vmem:[%s2655_s5] sm:$0xff] }
 0x168   : > { %1050 = vmatpush.bf16.msrb.mxu2 %v2037_v9 }
 0x16c   : > { %1516 = vmatpush.bf16.msra.mxu2 %v2076_v63 }
 0x170   : > { %1517 = vmatpush.bf16.msra.mxu2 %v2075_v27 }
 0x177   : > { %943 = vmatmul.bf16.gmra.mxu3 %v840_v37 }
 0x187   : > { %948 = vmatmul.bf16.gmra.mxu3 %v841_v49 }
 0x1aa   : > { %v919_v10 = vpop.f32.mrf.mxu3 }
 0x1ab   : > { %v920_v12 = vadd.f32 %v2380_v11, %v919_v10 }
 0x1ad   : > { %v954_v16 = vmax.f32 %v920_v12, 0.0  ;;  %v1900_v12 = vor.u32 %v2053_v33, %v1897_v34 }
 0x1af   : > { %1257 = vmatpush.bf16.msra.mxu1 %v1900_v12 }
 0x1b2   : > { %v921_v13 = vpop.f32.mrf.mxu3 }
 0x1b3   : > { %v922_v14 = vadd.f32 %v2380_v11, %v921_v13  ;;  %v1887_v13 = vld [vmem:[%s2657_s7 + $0x30] sm:$0xf] }
 0x1b5   : > { %v955_v17 = vmax.f32 %v922_v14, 0.0  ;;  %v2052_v14 = vld [vmem:[%s2657_s7 + $0x34] sm:$0xf0] }
 0x1b7   : > { %v968_v18 = vpack.c.bf16 %v955_v17, %v954_v16  ;;  %v1888_v17 = vor.u32 %v2052_v14, %v1887_v13 }
 0x1b9   : > { %1051 = vmatmul.bf16.vlgmr.msrb.gmra.mxu2 %v968_v18  ;;  %1214 = vmatpush.bf16.msra.mxu0 %v1888_v17 }
 0x1ba   : > { %v924_v19 = vpop.f32.mrf.mxu3 }
 0x1bb   : > { %v925_v23 = vadd.f32 %v2380_v11, %v924_v19 }
 0x1bd   : > { %v956_v29 = vmax.f32 %v925_v23, 0.0 }
 0x1c2   : > { %v926_v24 = vpop.f32.mrf.mxu3 }
 0x1c3   : > { %v927_v25 = vadd.f32 %v2380_v11, %v926_v24 }
 0x1c5   : > { %v957_v30 = vmax.f32 %v927_v25, 0.0 }
 0x1c7   : > { %v969_v31 = vpack.c.bf16 %v957_v30, %v956_v29 }
 0x1c9   : > { %1056 = vmatmul.bf16.gmra.mxu2 %v969_v31  ;;  %v2051_v31 = vld [vmem:[%s2657_s7 + $0x34] sm:$0xf] }
 0x1ca   : > { %v929_v35 = vpop.f32.mrf.mxu3 }
 0x1cb   : > { %v930_v36 = vadd.f32 %v2380_v11, %v929_v35  ;;  %v1889_v35 = vld [vmem:[%s2657_s7 + $0x38] sm:$0xf0] }
 0x1cd   : > { %v958_v39 = vmax.f32 %v930_v36, 0.0  ;;  %v1892_v36 = vor.u32 %v2051_v31, %v1889_v35 }
 0x1cf   : > { %1258 = vmatpush.bf16.msra.mxu1 %v1892_v36 }
 0x1d2   : > { %v931_v37 = vpop.f32.mrf.mxu3 }
 0x1d3   : > { %v932_v38 = vadd.f32 %v2380_v11, %v931_v37  ;;  %v1879_v37 = vld [vmem:[%s2657_s7 + $0x20] sm:$0xf] }
 0x1d5   : > { %v959_v40 = vmax.f32 %v932_v38, 0.0  ;;  %v2049_v38 = vld [vmem:[%s2657_s7 + $0x24] sm:$0xf] }
 0x1d7   : > { %v970_v41 = vpack.c.bf16 %v959_v40, %v958_v39  ;;  %v1881_v40 = vld [vmem:[%s2657_s7 + $0x28] sm:$0xf0] }
 0x1d9   : > { %1061 = vmatmul.bf16.gmra.mxu2 %v970_v41  ;;  %v1884_v41 = vor.u32 %v2049_v38, %v1881_v40  ;;  %v2070_v40 = vld [vmem:[%s2659_s9 + $0x48] sm:$0xff] }
 0x1da   : > { %v934_v42 = vpop.f32.mrf.mxu3 }
 0x1db   : > { %v935_v43 = vadd.f32 %v2380_v11, %v934_v42  ;;  %v1871_v42 = vld [vmem:[%s2657_s7 + $0x10] sm:$0xf]  ;;  %1259 = vmatpush.bf16.msra.mxu1 %v1884_v41 }
 0x1dd   : > { %v960_v46 = vmax.f32 %v935_v43, 0.0  ;;  %v2048_v43 = vld [vmem:[%s2657_s7 + $0x14] sm:$0xf0] }
 0x1e2   : > { %v936_v44 = vpop.f32.mrf.mxu3 }
 0x1e3   : > { %v937_v45 = vadd.f32 %v2380_v11, %v936_v44  ;;  %v1872_v44 = vor.u32 %v2048_v43, %v1871_v42 }
 0x1e5   : > { %v961_v47 = vmax.f32 %v937_v45, 0.0  ;;  %v2047_v45 = vld [vmem:[%s2657_s7 + $0x14] sm:$0xf] }
 0x1e7   : > { %v971_v48 = vpack.c.bf16 %v961_v47, %v960_v46  ;;  %v1873_v46 = vld [vmem:[%s2657_s7 + $0x18] sm:$0xf0] }
 0x1e8   : > { %v1876_v47 = vor.u32 %v2047_v45, %v1873_v46 }
 0x1e9   : > { %1066 = vmatmul.bf16.gmra.mxu2 %v971_v48  ;;  %v1863_v48 = vld [vmem:[%s2657_s7] sm:$0xf] }
 0x1ea   : > { %v939_v49 = vpop.f32.mrf.mxu3  ;;  %1260 = vmatpush.bf16.msra.mxu1 %v1876_v47 }
 0x1eb   : > { %v940_v50 = vadd.f32 %v2380_v11, %v939_v49  ;;  %v2046_v49 = vld [vmem:[%s2657_s7 + $0x4] sm:$0xf0] }
 0x1ed   : > { %v962_v53 = vmax.f32 %v940_v50, 0.0  ;;  %v2045_v50 = vld [vmem:[%s2657_s7 + $0x4] sm:$0xf] }
 0x1f2   : > { %v941_v51 = vpop.f32.mrf.mxu3 }
 0x1f3   : > { %v942_v52 = vadd.f32 %v2380_v11, %v941_v51  ;;  %v1864_v51 = vor.u32 %v2046_v49, %v1863_v48 }
 0x1f5   : > { %v963_v55 = vmax.f32 %v942_v52, 0.0  ;;  %v1865_v52 = vld [vmem:[%s2657_s7 + $0x8] sm:$0xf0] }
 0x1f7   : > { %v972_v56 = vpack.c.bf16 %v963_v55, %v962_v53  ;;  %v1868_v53 = vor.u32 %v2045_v50, %v1865_v52 }
 0x1f9   : > { %1071 = vmatmul.bf16.gmra.mxu2 %v972_v56  ;;  %1261 = vmatpush.bf16.msra.mxu1 %v1868_v53  ;;  %v2495_v56 = vld [vmem:[%s2656_s6] ss:$0 sm:$0xff] }
 0x1fa   : > { %v944_v60 = vpop.f32.mrf.mxu3 }
 0x1fb   : > { %v945_v28 = vadd.f32 %v2380_v11, %v944_v60 }
 0x1fd   : > { %v964_v9 = vmax.f32 %v945_v28, 0.0  ;;  %v2066_v28 = vld [vmem:[%s2659_s9 + $0x28] sm:$0xff] }
 0x1fe   : > { %1474 = vmatpush.bf16.msra.mxu3 %v2066_v28 }
 0x202   : > { %v946_v32 = vpop.f32.mrf.mxu3 }
 0x203   : > { %v947_v54 = vadd.f32 %v2380_v11, %v946_v32 }
 0x205   : > { %v965_v10 = vmax.f32 %v947_v54, 0.0  ;;  %v2074_v54 = vld [vmem:[%s2659_s9 + $0x68] sm:$0xff] }
 0x206   : > { %1518 = vmatpush.bf16.msra.mxu2 %v2074_v54 }
 0x207   : > { %v973_v16 = vpack.c.bf16 %v965_v10, %v964_v9  ;;  %v2065_v9 = vld [vmem:[%s2659_s9 + $0x20] sm:$0xff] }
 0x208   : > { %v2073_v10 = vld [vmem:[%s2659_s9 + $0x60] sm:$0xff]  ;;  %1475 = vmatpush.bf16.msra.mxu3 %v2065_v9 }
 0x209   : > { %1076 = vmatmul.bf16.gmra.mxu2 %v973_v16 }
 0x20a   : > { %v949_v18 = vpop.f32.mrf.mxu3  ;;  %1519 = vmatpush.bf16.msra.mxu2 %v2073_v10 }
 0x20b   : > { %v950_v19 = vadd.f32 %v2380_v11, %v949_v18 }
 0x20d   : > { %v966_v25 = vmax.f32 %v950_v19, 0.0 }
 0x212   : > { %v951_v23 = vpop.f32.mrf.mxu3 }
 0x213   : > { %v952_v24 = vadd.f32 %v2380_v11, %v951_v23  ;;  %v2050_v11 = vld [vmem:[%s2657_s7 + $0x24] sm:$0xf0]  ;;  %v2064_v23 = vld [vmem:[%s2659_s9 + $0x18] sm:$0xff] }
 0x214   : > { %v1880_v39 = vor.u32 %v2050_v11, %v1879_v37  ;;  %1476 = vmatpush.bf16.msra.mxu3 %v2064_v23  ;;  %v2063_v37 = vld [vmem:[%s2659_s9 + $0x10] sm:$0xff] }
 0x215   : > { %v967_v29 = vmax.f32 %v952_v24, 0.0  ;;  %v2072_v24 = vld [vmem:[%s2659_s9 + $0x58] sm:$0xff]  ;;  %v2071_v11 = vld [vmem:[%s2659_s9 + $0x50] sm:$0xff] }
 0x216   : > { %1215 = vmatpush.bf16.msra.mxu0 %v1880_v39  ;;  %1520 = vmatpush.bf16.msra.mxu2 %v2072_v24  ;;  %v2062_v39 = vld [vmem:[%s2659_s9 + $0x8] sm:$0xff] }
 0x217   : > { %v974_v30 = vpack.c.bf16 %v967_v29, %v966_v25 }
 0x218   : > { %1477 = vmatpush.bf16.msra.mxu3 %v2063_v37 }
 0x219   : > { %1081 = vmatmul.bf16.gmra.mxu2 %v974_v30 }
 0x21a   : > { %1216 = vmatpush.bf16.msra.mxu0 %v1872_v44  ;;  %1521 = vmatpush.bf16.msra.mxu2 %v2071_v11 }
 0x21c   : > { %1478 = vmatpush.bf16.msra.mxu3 %v2062_v39 }
 0x21e   : > { %1217 = vmatpush.bf16.msra.mxu0 %v1864_v51  ;;  %1522 = vmatpush.bf16.msra.mxu2 %v2070_v40 }
 0x23c   : > { %v1052_v55 = vpop.f32.mrf.mxu2 }
 0x23d   : > { %v1053_v57 = vadd.f32 %v2495_v56, %v1052_v55  ;;  %v2061_v55 = vld [vmem:[%s2659_s9] sm:$0xff] }
 0x23e   : > { %1479 = vmatpush.bf16.msra.mxu3 %v2061_v55 }
 0x23f   : > { %v1087_v60 = vmax.f32 %v1053_v57, 0.0  ;;  %v2069_v57 = vld [vmem:[%s2659_s9 + $0x40] sm:$0xff] }
 0x240   : > { %1523 = vmatpush.bf16.msra.mxu2 %v2069_v57 }
 0x244   : > { %v1054_v58 = vpop.f32.mrf.mxu2 }
 0x245   : > { %v1055_v59 = vadd.f32 %v2495_v56, %v1054_v58  ;;  %v1124_v58 = vld [vmem:[%s2658_s8] sm:$0x3] }
 0x247   : > { %v1088_v61 = vmax.f32 %v1055_v59, 0.0 }
 0x249   : > { %v1101_v21 = vpack.c.bf16 %v1088_v61, %v1087_v60  ;;  %v2562_v60 = vperm.slane %v1124_v58, 0  ;;  %v2564_v61 = vperm.slane %v1124_v58, 1 }
 0x24b   : > { %1218 = vmatmul.bf16.vlgmr.msra.gmra.mxu0 %v1101_v21  ;;  %1262 = vmatmul.bf16.vlgmr.msra.gmra.mxu1 %v1101_v21 }
 0x24c   : > { %v1057_v0 = vpop.f32.mrf.mxu2 }
 0x24d   : > { %v1058_v22 = vadd.f32 %v2495_v56, %v1057_v0 }
 0x24f   : > { %v1089_v2 = vmax.f32 %v1058_v22, 0.0 }
 0x254   : > { %v1059_v1 = vpop.f32.mrf.mxu2 }
 0x255   : > { %v1060_v20 = vadd.f32 %v2495_v56, %v1059_v1 }
 0x257   : > { %v1090_v3 = vmax.f32 %v1060_v20, 0.0 }
 0x259   : > { %v1102_v4 = vpack.c.bf16 %v1090_v3, %v1089_v2 }
 0x25b   : > { %1223 = vmatmul.bf16.gmra.mxu0 %v1102_v4  ;;  %1267 = vmatmul.bf16.gmra.mxu1 %v1102_v4 }
 0x25c   : > { %v1062_v6 = vpop.f32.mrf.mxu2 }
 0x25d   : > { %v1063_v7 = vadd.f32 %v2495_v56, %v1062_v6 }
 0x25f   : > { %v1091_v32 = vmax.f32 %v1063_v7, 0.0 }
 0x264   : > { %v1064_v26 = vpop.f32.mrf.mxu2 }
 0x265   : > { %v1065_v15 = vadd.f32 %v2495_v56, %v1064_v26 }
 0x267   : > { %v1092_v33 = vmax.f32 %v1065_v15, 0.0 }
 0x269   : > { %v1103_v34 = vpack.c.bf16 %v1092_v33, %v1091_v32 }
 0x26b   : > { %1228 = vmatmul.bf16.gmra.mxu0 %v1103_v34  ;;  %1272 = vmatmul.bf16.gmra.mxu1 %v1103_v34 }
 0x26c   : > { %v1067_v8 = vpop.f32.mrf.mxu2 }
 0x26d   : > { %v1068_v12 = vadd.f32 %v2495_v56, %v1067_v8 }
 0x26f   : > { %v1093_v16 = vmax.f32 %v1068_v12, 0.0 }
 0x274   : > { %v1069_v13 = vpop.f32.mrf.mxu2 }
 0x275   : > { %v1070_v14 = vadd.f32 %v2495_v56, %v1069_v13 }
 0x277   : > { %v1094_v17 = vmax.f32 %v1070_v14, 0.0 }
 0x279   : > { %v1104_v18 = vpack.c.bf16 %v1094_v17, %v1093_v16 }
 0x27b   : > { %1233 = vmatmul.bf16.gmra.mxu0 %v1104_v18  ;;  %1277 = vmatmul.bf16.gmra.mxu1 %v1104_v18 }
 0x27c   : > { %v1072_v19 = vpop.f32.mrf.mxu2 }
 0x27d   : > { %v1073_v25 = vadd.f32 %v2495_v56, %v1072_v19 }
 0x27f   : > { %v1095_v31 = vmax.f32 %v1073_v25, 0.0 }
 0x284   : > { %v1074_v29 = vpop.f32.mrf.mxu2 }
 0x285   : > { %v1075_v30 = vadd.f32 %v2495_v56, %v1074_v29 }
 0x287   : > { %v1096_v35 = vmax.f32 %v1075_v30, 0.0 }
 0x289   : > { %v1105_v36 = vpack.c.bf16 %v1096_v35, %v1095_v31 }
 0x28b   : > { %1238 = vmatmul.bf16.gmra.mxu0 %v1105_v36  ;;  %1282 = vmatmul.bf16.gmra.mxu1 %v1105_v36 }
 0x28c   : > { %v1077_v38 = vpop.f32.mrf.mxu2 }
 0x28d   : > { %v1078_v41 = vadd.f32 %v2495_v56, %v1077_v38 }
 0x28f   : > { %v1097_v44 = vmax.f32 %v1078_v41, 0.0 }
 0x294   : > { %v1079_v42 = vpop.f32.mrf.mxu2 }
 0x295   : > { %v1080_v43 = vadd.f32 %v2495_v56, %v1079_v42 }
 0x297   : > { %v1098_v45 = vmax.f32 %v1080_v43, 0.0 }
 0x299   : > { %v1106_v46 = vpack.c.bf16 %v1098_v45, %v1097_v44 }
 0x29b   : > { %1243 = vmatmul.bf16.gmra.mxu0 %v1106_v46  ;;  %1287 = vmatmul.bf16.gmra.mxu1 %v1106_v46 }
 0x29c   : > { %v1082_v47 = vpop.f32.mrf.mxu2 }
 0x29d   : > { %v1083_v48 = vadd.f32 %v2495_v56, %v1082_v47 }
 0x29f   : > { %v1099_v51 = vmax.f32 %v1083_v48, 0.0 }
 0x2a4   : > { %v1084_v49 = vpop.f32.mrf.mxu2 }
 0x2a5   : > { %v1085_v50 = vadd.f32 %v2495_v56, %v1084_v49 }
 0x2a7   : > { %v1100_v52 = vmax.f32 %v1085_v50, 0.0 }
 0x2a9   : > { %v1107_v53 = vpack.c.bf16 %v1100_v52, %v1099_v51 }
 0x2ab   : > { %1248 = vmatmul.bf16.gmra.mxu0 %v1107_v53  ;;  %1292 = vmatmul.bf16.gmra.mxu1 %v1107_v53 }
 0x2c8   : > { %v1219_v56 = vpop.f32.mrf.mxu0  ;;  %v1263_v59 = vpop.f32.mrf.mxu1 }
 0x2c9   : > { %v1220_v62 = vadd.f32 %v1219_v56, %v2562_v60  ;;  %v1264_v63 = vadd.f32 %v1263_v59, %v2564_v61 }
 0x2cb   : > { %v1298_v20 = vmax.f32 %v1220_v62, 0.0  ;;  %v1299_v2 = vmax.f32 %v1264_v63, 0.0 }
 0x2d0   : > { %v1221_v21 = vpop.f32.mrf.mxu0  ;;  %v1265_v0 = vpop.f32.mrf.mxu1 }
 0x2d1   : > { %v1222_v22 = vadd.f32 %v1221_v21, %v2562_v60  ;;  %v1266_v1 = vadd.f32 %v1265_v0, %v2564_v61 }
 0x2d3   : > { %v1300_v3 = vmax.f32 %v1222_v22, 0.0  ;;  %v1301_v4 = vmax.f32 %v1266_v1, 0.0 }
 0x2d5   : > { %v1326_v5 = vpack.c.bf16 %v1300_v3, %v1298_v20  ;;  %v1327_v27 = vpack.c.bf16 %v1301_v4, %v1299_v2 }
 0x2d7   : > { %1480 = vmatmul.bf16.vlgmr.msra.gmra.mxu3 %v1326_v5  ;;  %1524 = vmatmul.bf16.vlgmr.msra.gmra.mxu2 %v1327_v27 }
 0x2d8   : > { %v1224_v6 = vpop.f32.mrf.mxu0  ;;  %v1268_v28 = vpop.f32.mrf.mxu1 }
 0x2d9   : > { %v1225_v7 = vadd.f32 %v1224_v6, %v2562_v60  ;;  %v1269_v26 = vadd.f32 %v1268_v28, %v2564_v61 }
 0x2db   : > { %v1302_v54 = vmax.f32 %v1225_v7, 0.0  ;;  %v1303_v8 = vmax.f32 %v1269_v26, 0.0 }
 0x2e0   : > { %v1226_v15 = vpop.f32.mrf.mxu0  ;;  %v1270_v32 = vpop.f32.mrf.mxu1 }
 0x2e1   : > { %v1227_v33 = vadd.f32 %v1226_v15, %v2562_v60  ;;  %v1271_v34 = vadd.f32 %v1270_v32, %v2564_v61 }
 0x2e3   : > { %v1304_v9 = vmax.f32 %v1227_v33, 0.0  ;;  %v1305_v10 = vmax.f32 %v1271_v34, 0.0 }
 0x2e5   : > { %v1328_v12 = vpack.c.bf16 %v1304_v9, %v1302_v54  ;;  %v1329_v13 = vpack.c.bf16 %v1305_v10, %v1303_v8 }
 0x2e7   : > { %1485 = vmatmul.bf16.gmra.mxu3 %v1328_v12  ;;  %1529 = vmatmul.bf16.gmra.mxu2 %v1329_v13 }
 0x2e8   : > { %v1229_v14 = vpop.f32.mrf.mxu0  ;;  %v1273_v16 = vpop.f32.mrf.mxu1 }
 0x2e9   : > { %v1230_v17 = vadd.f32 %v1229_v14, %v2562_v60  ;;  %v1274_v18 = vadd.f32 %v1273_v16, %v2564_v61 }
 0x2eb   : > { %v1306_v29 = vmax.f32 %v1230_v17, 0.0  ;;  %v1307_v30 = vmax.f32 %v1274_v18, 0.0 }
 0x2f0   : > { %v1231_v19 = vpop.f32.mrf.mxu0  ;;  %v1275_v23 = vpop.f32.mrf.mxu1 }
 0x2f1   : > { %v1232_v24 = vadd.f32 %v1231_v19, %v2562_v60  ;;  %v1276_v25 = vadd.f32 %v1275_v23, %v2564_v61 }
 0x2f3   : > { %v1308_v31 = vmax.f32 %v1232_v24, 0.0  ;;  %v1309_v35 = vmax.f32 %v1276_v25, 0.0 }
 0x2f5   : > { %v1330_v36 = vpack.c.bf16 %v1308_v31, %v1306_v29  ;;  %v1331_v37 = vpack.c.bf16 %v1309_v35, %v1307_v30  ;;  %v2597_v29 = vld [vmem:[%s2660_s10] ss:$0 sm:$0xff] }
 0x2f7   : > { %1490 = vmatmul.bf16.gmra.mxu3 %v1330_v36  ;;  %1534 = vmatmul.bf16.gmra.mxu2 %v1331_v37 }
 0x2f8   : > { %v1234_v11 = vpop.f32.mrf.mxu0  ;;  %v1278_v38 = vpop.f32.mrf.mxu1 }
 0x2f9   : > { %v1235_v39 = vadd.f32 %v1234_v11, %v2562_v60  ;;  %v1279_v40 = vadd.f32 %v1278_v38, %v2564_v61 }
 0x2fb   : > { %v1310_v45 = vmax.f32 %v1235_v39, 0.0  ;;  %v1311_v46 = vmax.f32 %v1279_v40, 0.0 }
 0x300   : > { %v1236_v41 = vpop.f32.mrf.mxu0  ;;  %v1280_v42 = vpop.f32.mrf.mxu1 }
 0x301   : > { %v1237_v43 = vadd.f32 %v1236_v41, %v2562_v60  ;;  %v1281_v44 = vadd.f32 %v1280_v42, %v2564_v61 }
 0x303   : > { %v1312_v47 = vmax.f32 %v1237_v43, 0.0  ;;  %v1313_v48 = vmax.f32 %v1281_v44, 0.0 }
 0x305   : > { %v1332_v49 = vpack.c.bf16 %v1312_v47, %v1310_v45  ;;  %v1333_v50 = vpack.c.bf16 %v1313_v48, %v1311_v46 }
 0x307   : > { %1495 = vmatmul.bf16.gmra.mxu3 %v1332_v49  ;;  %1539 = vmatmul.bf16.gmra.mxu2 %v1333_v50 }
 0x308   : > { %v1239_v51 = vpop.f32.mrf.mxu0  ;;  %v1283_v52 = vpop.f32.mrf.mxu1 }
 0x309   : > { %v1240_v53 = vadd.f32 %v1239_v51, %v2562_v60  ;;  %v1284_v55 = vadd.f32 %v1283_v52, %v2564_v61 }
 0x30b   : > { %v1314_v62 = vmax.f32 %v1240_v53, 0.0  ;;  %v1315_v63 = vmax.f32 %v1284_v55, 0.0 }
 0x310   : > { %v1241_v57 = vpop.f32.mrf.mxu0  ;;  %v1285_v58 = vpop.f32.mrf.mxu1 }
 0x311   : > { %v1242_v56 = vadd.f32 %v1241_v57, %v2562_v60  ;;  %v1286_v59 = vadd.f32 %v1285_v58, %v2564_v61 }
 0x313   : > { %v1316_v21 = vmax.f32 %v1242_v56, 0.0  ;;  %v1317_v0 = vmax.f32 %v1286_v59, 0.0 }
 0x315   : > { %v1334_v22 = vpack.c.bf16 %v1316_v21, %v1314_v62  ;;  %v1335_v1 = vpack.c.bf16 %v1317_v0, %v1315_v63 }
 0x317   : > { %1500 = vmatmul.bf16.gmra.mxu3 %v1334_v22  ;;  %1544 = vmatmul.bf16.gmra.mxu2 %v1335_v1 }
 0x318   : > { %v1244_v20 = vpop.f32.mrf.mxu0  ;;  %v1288_v2 = vpop.f32.mrf.mxu1 }
 0x319   : > { %v1245_v3 = vadd.f32 %v1244_v20, %v2562_v60  ;;  %v1289_v4 = vadd.f32 %v1288_v2, %v2564_v61 }
 0x31b   : > { %v1318_v7 = vmax.f32 %v1245_v3, 0.0  ;;  %v1319_v26 = vmax.f32 %v1289_v4, 0.0 }
 0x320   : > { %v1246_v5 = vpop.f32.mrf.mxu0  ;;  %v1290_v27 = vpop.f32.mrf.mxu1 }
 0x321   : > { %v1247_v6 = vadd.f32 %v1246_v5, %v2562_v60  ;;  %v1291_v28 = vadd.f32 %v1290_v27, %v2564_v61 }
 0x323   : > { %v1320_v15 = vmax.f32 %v1247_v6, 0.0  ;;  %v1321_v32 = vmax.f32 %v1291_v28, 0.0 }
 0x325   : > { %v1336_v33 = vpack.c.bf16 %v1320_v15, %v1318_v7  ;;  %v1337_v34 = vpack.c.bf16 %v1321_v32, %v1319_v26 }
 0x327   : > { %1505 = vmatmul.bf16.gmra.mxu3 %v1336_v33  ;;  %1549 = vmatmul.bf16.gmra.mxu2 %v1337_v34 }
 0x328   : > { %v1249_v54 = vpop.f32.mrf.mxu0  ;;  %v1293_v8 = vpop.f32.mrf.mxu1 }
 0x329   : > { %v1250_v9 = vadd.f32 %v1249_v54, %v2562_v60  ;;  %v1294_v10 = vadd.f32 %v1293_v8, %v2564_v61 }
 0x32b   : > { %v1322_v17 = vmax.f32 %v1250_v9, 0.0  ;;  %v1323_v18 = vmax.f32 %v1294_v10, 0.0 }
 0x330   : > { %v1251_v12 = vpop.f32.mrf.mxu0  ;;  %v1295_v13 = vpop.f32.mrf.mxu1 }
 0x331   : > { %v1252_v14 = vadd.f32 %v1251_v12, %v2562_v60  ;;  %v1296_v16 = vadd.f32 %v1295_v13, %v2564_v61 }
 0x333   : > { %v1324_v19 = vmax.f32 %v1252_v14, 0.0  ;;  %v1325_v23 = vmax.f32 %v1296_v16, 0.0 }
 0x335   : > { %v1338_v24 = vpack.c.bf16 %v1324_v19, %v1322_v17  ;;  %v1339_v25 = vpack.c.bf16 %v1325_v23, %v1323_v18 }
 0x337   : > { %1510 = vmatmul.bf16.gmra.mxu3 %v1338_v24  ;;  %1554 = vmatmul.bf16.gmra.mxu2 %v1339_v25 }
 0x35a   : > { %v1481_v30 = vpop.f32.mrf.mxu3  ;;  %v1525_v31 = vpop.f32.mrf.mxu2 }
 0x35b   : > { %v1482_v60 = vadd.f32 %v2597_v29, %v1481_v30 }
 0x35d   : > { %v1526_v61 = vadd.f32 %v1525_v31, %v1482_v60 }
 0x35f   : > { %1561 = vst.msk [vmem:[%s2604_s28] sm:$0xff] %vm1560_vm1, %v1526_v61 }
 0x362   : > { %v1483_v35 = vpop.f32.mrf.mxu3  ;;  %v1527_v36 = vpop.f32.mrf.mxu2 }
 0x363   : > { %v1484_v37 = vadd.f32 %v2597_v29, %v1483_v35 }
 0x365   : > { %v1528_v11 = vadd.f32 %v1527_v36, %v1484_v37 }
 0x367   : > { %1562 = vst.msk [vmem:[%s2604_s28 + $0x8] sm:$0xff] %vm1560_vm1, %v1528_v11 }
 0x36a   : > { %v1486_v38 = vpop.f32.mrf.mxu3  ;;  %v1530_v39 = vpop.f32.mrf.mxu2 }
 0x36b   : > { %v1487_v40 = vadd.f32 %v2597_v29, %v1486_v38 }
 0x36d   : > { %v1531_v41 = vadd.f32 %v1530_v39, %v1487_v40 }
 0x36f   : > { %1563 = vst.msk [vmem:[%s2604_s28 + $0x10] sm:$0xff] %vm1560_vm1, %v1531_v41 }
 0x372   : > { %v1488_v42 = vpop.f32.mrf.mxu3  ;;  %v1532_v43 = vpop.f32.mrf.mxu2 }
 0x373   : > { %v1489_v44 = vadd.f32 %v2597_v29, %v1488_v42 }
 0x375   : > { %v1533_v45 = vadd.f32 %v1532_v43, %v1489_v44 }
 0x377   : > { %1564 = vst.msk [vmem:[%s2604_s28 + $0x18] sm:$0xff] %vm1560_vm1, %v1533_v45 }
 0x37a   : > { %v1491_v46 = vpop.f32.mrf.mxu3  ;;  %v1535_v47 = vpop.f32.mrf.mxu2 }
 0x37b   : > { %v1492_v48 = vadd.f32 %v2597_v29, %v1491_v46 }
 0x37d   : > { %v1536_v49 = vadd.f32 %v1535_v47, %v1492_v48 }
 0x37f   : > { %1565 = vst.msk [vmem:[%s2604_s28 + $0x20] sm:$0xff] %vm1560_vm1, %v1536_v49 }
 0x382   : > { %v1493_v50 = vpop.f32.mrf.mxu3  ;;  %v1537_v51 = vpop.f32.mrf.mxu2 }
 0x383   : > { %v1494_v52 = vadd.f32 %v2597_v29, %v1493_v50 }
 0x385   : > { %v1538_v53 = vadd.f32 %v1537_v51, %v1494_v52 }
 0x387   : > { %1566 = vst.msk [vmem:[%s2604_s28 + $0x28] sm:$0xff] %vm1560_vm1, %v1538_v53 }
 0x38a   : > { %v1496_v55 = vpop.f32.mrf.mxu3  ;;  %v1540_v57 = vpop.f32.mrf.mxu2 }
 0x38b   : > { %v1497_v58 = vadd.f32 %v2597_v29, %v1496_v55 }
 0x38d   : > { %v1541_v56 = vadd.f32 %v1540_v57, %v1497_v58 }
 0x38f   : > { %1567 = vst.msk [vmem:[%s2604_s28 + $0x30] sm:$0xff] %vm1560_vm1, %v1541_v56 }
 0x392   : > { %v1498_v59 = vpop.f32.mrf.mxu3  ;;  %v1542_v62 = vpop.f32.mrf.mxu2 }
 0x393   : > { %v1499_v63 = vadd.f32 %v2597_v29, %v1498_v59 }
 0x395   : > { %v1543_v21 = vadd.f32 %v1542_v62, %v1499_v63 }
 0x397   : > { %1568 = vst.msk [vmem:[%s2604_s28 + $0x38] sm:$0xff] %vm1560_vm1, %v1543_v21 }
 0x39a   : > { %v1501_v0 = vpop.f32.mrf.mxu3  ;;  %v1545_v22 = vpop.f32.mrf.mxu2 }
 0x39b   : > { %v1502_v1 = vadd.f32 %v2597_v29, %v1501_v0 }
 0x39d   : > { %v1546_v20 = vadd.f32 %v1545_v22, %v1502_v1 }
 0x39f   : > { %1569 = vst.msk [vmem:[%s2604_s28 + $0x40] sm:$0xff] %vm1560_vm1, %v1546_v20 }
 0x3a2   : > { %v1503_v2 = vpop.f32.mrf.mxu3  ;;  %v1547_v3 = vpop.f32.mrf.mxu2 }
 0x3a3   : > { %v1504_v4 = vadd.f32 %v2597_v29, %v1503_v2 }
 0x3a5   : > { %v1548_v5 = vadd.f32 %v1547_v3, %v1504_v4 }
 0x3a7   : > { %1570 = vst.msk [vmem:[%s2604_s28 + $0x48] sm:$0xff] %vm1560_vm1, %v1548_v5 }
 0x3aa   : > { %v1506_v27 = vpop.f32.mrf.mxu3  ;;  %v1550_v6 = vpop.f32.mrf.mxu2 }
 0x3ab   : > { %v1507_v28 = vadd.f32 %v2597_v29, %v1506_v27 }
 0x3ad   : > { %v1551_v7 = vadd.f32 %v1550_v6, %v1507_v28 }
 0x3af   : > { %1571 = vst.msk [vmem:[%s2604_s28 + $0x50] sm:$0xff] %vm1560_vm1, %v1551_v7 }
 0x3b2   : > { %v1508_v26 = vpop.f32.mrf.mxu3  ;;  %v1552_v15 = vpop.f32.mrf.mxu2 }
 0x3b3   : > { %v1509_v32 = vadd.f32 %v2597_v29, %v1508_v26 }
 0x3b5   : > { %v1553_v33 = vadd.f32 %v1552_v15, %v1509_v32 }
 0x3b7   : > { %1572 = vst.msk [vmem:[%s2604_s28 + $0x58] sm:$0xff] %vm1560_vm1, %v1553_v33 }
 0x3ba   : > { %v1511_v34 = vpop.f32.mrf.mxu3  ;;  %v1555_v54 = vpop.f32.mrf.mxu2 }
 0x3bb   : > { %v1512_v8 = vadd.f32 %v2597_v29, %v1511_v34 }
 0x3bd   : > { %v1556_v9 = vadd.f32 %v1555_v54, %v1512_v8 }
 0x3bf   : > { %1573 = vst.msk [vmem:[%s2604_s28 + $0x60] sm:$0xff] %vm1560_vm1, %v1556_v9 }
 0x3c2   : > { %v1513_v10 = vpop.f32.mrf.mxu3  ;;  %v1557_v13 = vpop.f32.mrf.mxu2 }
 0x3c3   : > { %v1514_v12 = vadd.f32 %v2597_v29, %v1513_v10 }
 0x3c5   : > { %v1558_v14 = vadd.f32 %v1557_v13, %v1514_v12 }
 0x3c7   : > { %1574 = vst.msk [vmem:[%s2604_s28 + $0x68] sm:$0xff] %vm1560_vm1, %v1558_v14 }
 0x3c8 PF: > { %s21_s17 = sadd.s32 1, %s2099_s17  }
 0x3c9   : > { %p18_p4 = scmp.ge.s32.totalorder %s21_s17, 4  }
 0x3cb   :  { %20 = sbr.rel (!%p18_p4) target bundleno = 1 (0x1), region = 94 }

</bundles_post_ra>
